<compile_context>
chip_gen: v7x
topology: tpu7x:2x2x1
jax: 0.10.0
libtpu: 0.0.40
codegen_flags: <defaults>
</compile_context>

<pallas_src>
import functools
import math

import numpy as np

import jax
import jax.numpy as jnp
from jax.experimental import pallas as pl
from jax.experimental.pallas import tpu as pltpu


def _int_pow(x, n):
    """x ** n for static integer n >= 0 via a multiply chain (pure VPU)."""
    assert n >= 0
    if n == 0:
        return jnp.ones_like(x)
    acc = None
    base = x
    while n:
        if n & 1:
            acc = base if acc is None else acc * base
        n >>= 1
        if n:
            base = base * base
    return acc


def _pow(x, alpha):
    """x ** alpha for static alpha > 0, minimizing EUP (transcendental) ops."""
    a = float(alpha)
    if a.is_integer():
        return _int_pow(x, int(a))
    if (2.0 * a).is_integer():
        # half-integer: x^a = x^(a - 0.5) * sqrt(x)  (exact 0 at x == 0)
        return _int_pow(x, int(a - 0.5)) * jnp.sqrt(x)
    # general non-integer alpha: exp(a * log(x)), safe at x == 0
    safe = jnp.maximum(x, 1e-30)
    return jnp.where(x > 0.0, jnp.exp(a * jnp.log(safe)), 0.0)


def _cdw_ce_kernel(*refs, c, g, alpha, delta, eps, transform, use_table,
                   n_orig, mask_rows):
    # Unpack refs: logits, target, lane consts, [expand], [tab_hi, tab_lo], out
    refs = list(refs)
    logits_ref = refs.pop(0)                 # (TN, GC) native dtype
    target_ref = refs.pop(0)                 # (TN, G8) f32 (G8 = 1 or >= 8)
    lane_ref = refs.pop(0)                   # (2, GC) f32: row0 = lane%C, row1 = lane//C
    expand_ref = refs.pop(0) if g > 1 else None    # (G8, GC) f32 one-hot
    tab_hi_ref = refs.pop(0) if use_table else None  # (GC, GC) bf16
    tab_lo_ref = refs.pop(0) if use_table else None  # (GC, GC) bf16
    out_ref = refs.pop(0)                    # (1, 1) f32 per-tile partial

    x = logits_ref[...].astype(jnp.float32)  # (TN, GC)
    t = target_ref[...].astype(jnp.float32)
    cls_row = lane_ref[0:1, :]               # (1, GC) class index per lane

    if g > 1:
        # Broadcast each group's target to its C lanes: (TN,G8) @ (G8,GC).
        # One-hot matmul over small integers -> exact; MXU is otherwise idle.
        tgt = jnp.dot(t, expand_ref[...], preferred_element_type=jnp.float32)
    else:
        tgt = t                              # (TN, 1) broadcasts over classes

    if use_table:
        # Weight transform via MXU table lookup: one-hot(target) @ table.
        # Table passed as bf16 hi + lo so the matmul runs at the fast bf16
        # rate with ~f32 accuracy (one-hot products are exact).
        onehot = (tgt == cls_row).astype(jnp.bfloat16)           # (TN, GC)
        w = jnp.dot(onehot, tab_hi_ref[...], preferred_element_type=jnp.float32)
        w = w + jnp.dot(onehot, tab_lo_ref[...], preferred_element_type=jnp.float32)
    else:
        w = jnp.abs(cls_row - tgt)                               # (TN, GC)
        if transform == 'huber':
            w = jnp.where(w < delta, 0.5 * w * w, delta * (w - 0.5 * delta))
        elif transform == 'log':
            # distances are non-negative integers, so log(1+w) == log1p(w)
            w = _pow(jnp.log(1.0 + w), alpha)
        elif transform == 'power':
            w = _pow(w, alpha)
        else:
            raise NotImplementedError(transform)

    elem = jnp.log(1.0 - x + eps) * w                            # (TN, GC)

    def _reduce(e):
        # lane (XLU) reduce first, then sublanes -> (1, 1)
        return jnp.sum(jnp.sum(e, axis=1, keepdims=True), axis=0, keepdims=True)

    if not mask_rows:
        out_ref[...] = -_reduce(elem)
    else:
        # All padded / out-of-range original rows live in the LAST tile, so
        # the per-element validity select only runs there (saves one VPU
        # select per element on every full tile).
        i = pl.program_id(0)
        is_last = i == pl.num_programs(0) - 1

        @pl.when(jnp.logical_not(is_last))
        def _():
            out_ref[...] = -_reduce(elem)

        @pl.when(is_last)
        def _():
            tn = x.shape[0]
            row = jax.lax.broadcasted_iota(jnp.int32, (tn, 1), 0)
            grp = lane_ref[1:2, :].astype(jnp.int32)             # (1, GC)
            orig = (row + i * tn) * g + grp                      # original row id
            # select (NOT multiply-by-mask) so NaN/garbage from OOB block
            # reads / pad rows is discarded.
            out_ref[...] = -_reduce(jnp.where(orig < n_orig, elem, 0.0))


def _choose_tile_rows(n_f, gc, itemsize, max_rows_per_tile=None):
    """Pick rows per tile from the lane-padded VMEM footprint (~30 MiB target)."""
    lane_w = -(-gc // 128) * 128
    sub = {4: 8, 2: 16, 1: 32}.get(int(itemsize), 8)   # sublane multiple per dtype
    # 2x double-buffered native logits + 2x double-buffered f32 target
    # (lane-padded to 128) + ~5 live f32 whole-tile temporaries.
    bytes_per_row = 2 * lane_w * itemsize + 2 * 128 * 4 + 5 * lane_w * 4
    tn = (30 * 1024 * 1024) // bytes_per_row
    # keep the logits block itself around 4-8 MiB (per-step overhead amortized)
    tn = min(tn, (6 * 1024 * 1024) // max(1, lane_w * itemsize))
    if max_rows_per_tile is not None:
        tn = min(tn, int(max_rows_per_tile))
    if n_f >= 1024:
        # keep >= 2 grid steps so both v7x TensorCores get work
        tn = min(tn, -(-n_f // 2))
    tn = max(int(tn), sub)
    if tn >= n_f:
        return int(n_f)                      # full-dim block: always legal
    return max(sub, (tn // sub) * sub)       # round DOWN, never above the cap


def cdw_ce_loss(logits, target, *, num_classes, alpha=2.0, delta=3.0,
                reduction='mean', transform='power', eps=1e-8,
                max_rows_per_tile=None):
    assert alpha > 0, 'Alpha should be larger than 0'
    assert reduction in ('mean', 'sum')
    assert transform in ('huber', 'log', 'power')
    n, c = logits.shape
    assert c == num_classes and n >= 1

    # ---- generalized lane fold: G = 128 // gcd(C, 128) for any C < 128 ----
    g = 1
    if c < 128:
        g0 = 128 // math.gcd(c, 128)
        if n >= 8 * g0:          # only fold when there are enough rows
            g = g0
    pad = (-n) % g
    if pad:
        # small row pad so the contiguous (free) reshape is legal; padded rows
        # are discarded by the in-kernel validity mask (gated to last tile).
        logits = jnp.pad(logits, ((0, pad), (0, 0)))
        target = jnp.pad(target, ((0, pad),))
    n_pad = n + pad
    n_f = n_pad // g
    gc = g * c

    logits_f = logits.reshape(n_f, gc)                       # native dtype, contiguous
    target_f = target.astype(jnp.float32).reshape(n_f, g)
    g8 = g
    if g > 1:
        g8 = max(8, g)                                       # pad matmul contraction dim
        if g8 != g:
            target_f = jnp.pad(target_f, ((0, 0), (0, g8 - g)))

    # ---- loop-invariant constants passed as resident inputs (no rebuild/CSE) ----
    lane_idx = np.arange(gc)
    cls_np = (lane_idx % c).astype(np.float32)
    grp_np = (lane_idx // c).astype(np.float32)
    lane_const = jnp.asarray(np.stack([cls_np, grp_np], axis=0))      # (2, GC)

    expand = None
    if g > 1:
        expand = jnp.asarray(
            (np.arange(g8)[:, None] == (lane_idx // c)[None, :]).astype(np.float32))

    # ---- MXU-table path for EUP/VPU-heavy transforms ----
    a = float(alpha)
    heavy = (transform in ('log', 'huber')) or (not a.is_integer())
    use_table = heavy and (gc % 128 == 0) and (gc <= 256)
    tab_hi = tab_lo = None
    if use_table:
        dist = np.abs(cls_np[None, :] - cls_np[:, None]).astype(np.float64)
        if transform == 'huber':
            tab = np.where(dist < delta, 0.5 * dist * dist,
                           delta * (dist - 0.5 * delta))
        elif transform == 'log':
            tab = np.log1p(dist) ** a
        else:
            tab = dist ** a
        tab = tab * (grp_np[None, :] == grp_np[:, None])     # block-diagonal over groups
        tab32 = jnp.asarray(tab, dtype=jnp.float32)
        tab_hi = tab32.astype(jnp.bfloat16)
        tab_lo = (tab32 - tab_hi.astype(jnp.float32)).astype(jnp.bfloat16)

    # ---- tiling ----
    itemsize = jnp.dtype(logits.dtype).itemsize
    tile_rows = _choose_tile_rows(n_f, gc, itemsize, max_rows_per_tile)
    num_tiles = -(-n_f // tile_rows)
    mask_rows = (pad > 0) or (num_tiles * tile_rows != n_f)

    kernel = functools.partial(
        _cdw_ce_kernel, c=c, g=g, alpha=a, delta=float(delta), eps=float(eps),
        transform=transform, use_table=use_table, n_orig=n, mask_rows=mask_rows)

    in_specs = [
        pl.BlockSpec((tile_rows, gc), lambda i: (i, 0)),
        pl.BlockSpec((tile_rows, g8), lambda i: (i, 0)),
        pl.BlockSpec((2, gc), lambda i: (0, 0)),             # resident constant
    ]
    args = [logits_f, target_f, lane_const]
    if g > 1:
        in_specs.append(pl.BlockSpec((g8, gc), lambda i: (0, 0)))
        args.append(expand)
    if use_table:
        in_specs.append(pl.BlockSpec((gc, gc), lambda i: (0, 0)))
        in_specs.append(pl.BlockSpec((gc, gc), lambda i: (0, 0)))
        args.extend([tab_hi, tab_lo])

    partials = pl.pallas_call(
        kernel,
        out_shape=jax.ShapeDtypeStruct((num_tiles, 1, 1), jnp.float32),
        grid=(num_tiles,),
        in_specs=in_specs,
        out_specs=pl.BlockSpec((None, 1, 1), lambda i: (i, 0, 0)),
        compiler_params=pltpu.CompilerParams(
            dimension_semantics=("parallel",),
            vmem_limit_bytes=48 * 1024 * 1024),
    )(*args)

    total = jnp.sum(partials)
    if reduction == 'mean':
        return total * (1.0 / n)   # static 1/N (true N, independent of padding)
    return total


def _cdw_ce_ref(logits, target, *, num_classes, alpha=2.0, delta=3.0,
                reduction='mean', transform='power', eps=1e-8):
    # Pure-JAX reference mirroring the PyTorch module.
    w_buf = jnp.arange(num_classes, dtype=jnp.float32)
    w = jnp.abs(w_buf[None, :] - target.astype(jnp.float32).reshape(-1, 1))
    if transform == 'huber':
        w = jnp.where(w < delta, 0.5 * w ** 2, delta * (w - 0.5 * delta))
    elif transform == 'log':
        w = jnp.log1p(w) ** alpha
    else:
        w = w ** alpha
    loss = -jnp.sum(jnp.log(1.0 - logits.astype(jnp.float32) + eps) * w, axis=-1)
    return jnp.mean(loss) if reduction == 'mean' else jnp.sum(loss)


if __name__ == "__main__":
    key = jax.random.PRNGKey(0)

    def make_inputs(k, n, c, dtype):
        k1, k2 = jax.random.split(k)
        raw = jax.random.normal(k1, (n, c), dtype=jnp.float32)
        probs = jax.nn.softmax(raw, axis=-1).astype(dtype)   # loss expects probabilities
        tgt = jax.random.randint(k2, (n,), 0, c, dtype=jnp.int32)
        return probs, tgt

    # (n, c, dtype, transform, alpha, reduction, max_rows_per_tile)
    configs = [
        (256, 16,  jnp.bfloat16, 'power', 2.0, 'mean', None),  # fold G=8, bf16, int-pow path
        (300, 16,  jnp.float32,  'huber', 2.0, 'sum',  16),    # fold + pad, MXU table, ragged tiles
        (768, 10,  jnp.float32,  'log',   2.5, 'mean', None),  # big fold G=64 (GC=640), EUP path
        (45,  200, jnp.float32,  'power', 3.0, 'sum',  16),    # no fold (C>=128), ragged-tile mask
        (128, 128, jnp.bfloat16, 'log',   2.0, 'mean', None),  # no fold, MXU table, bf16 ingest
        (64,  10,  jnp.float32,  'power', 2.5, 'sum',  None),  # tiny N (no fold), half-integer alpha
    ]

    keys = jax.random.split(key, len(configs))
    for cfg_key, (n, c, dtype, transform, alpha, reduction, max_rows) in zip(keys, configs):
        probs, tgt = make_inputs(cfg_key, n, c, dtype)
        out = cdw_ce_loss(probs, tgt, num_classes=c, alpha=alpha, delta=3.0,
                          reduction=reduction, transform=transform,
                          max_rows_per_tile=max_rows)
        out = jax.block_until_ready(out)
        ref = _cdw_ce_ref(probs, tgt, num_classes=c, alpha=alpha, delta=3.0,
                          reduction=reduction, transform=transform)
        assert jnp.allclose(out, ref, rtol=1e-4, atol=1e-4), \
            (n, c, transform, reduction, float(out), float(ref))

    print("KERNEL_OK")
</pallas_src>

<mosaic_0001>
module attributes {stable_mosaic.version = 11 : i64} {
  func.func @_cdw_ce_kernel(%arg0: i32, %arg1: memref<32x128xbf16, #tpu.memory_space<vmem>>, %arg2: memref<32x8xf32, #tpu.memory_space<vmem>>, %arg3: memref<2x128xf32, #tpu.memory_space<vmem>>, %arg4: memref<8x128xf32, #tpu.memory_space<vmem>>, %arg5: memref<1x1x1xf32, #tpu.memory_space<vmem>>) attributes {dimension_semantics = [#tpu.dimension_semantics<parallel>], iteration_bounds = array<i64: 1>, scalar_prefetch = 0 : i64, scratch_operands = 0 : i64, tpu.core_type = #tpu.core_type<tc>, window_params = [{transform_indices = @transform_0, window_bounds = array<i64: 32, 128>}, {transform_indices = @transform_1, window_bounds = array<i64: 32, 8>}, {pipeline_mode = #tpu.pipeline_mode<synchronous>, transform_indices = @transform_2, window_bounds = array<i64: 2, 128>}, {pipeline_mode = #tpu.pipeline_mode<synchronous>, transform_indices = @transform_3, window_bounds = array<i64: 8, 128>}, {transform_indices = @transform_4, window_bounds = array<i64: 1, 1, 1>}]} {
    %c0 = arith.constant 0 : index
    %c0_0 = arith.constant 0 : index
    %0 = vector.load %arg1[%c0, %c0_0] : memref<32x128xbf16, #tpu.memory_space<vmem>>, vector<32x128xbf16>
    %1 = arith.extf %0 : vector<32x128xbf16> to vector<32x128xf32>
    %c0_1 = arith.constant 0 : index
    %c0_2 = arith.constant 0 : index
    %2 = vector.load %arg2[%c0_1, %c0_2] : memref<32x8xf32, #tpu.memory_space<vmem>>, vector<32x8xf32>
    %c0_3 = arith.constant 0 : index
    %c0_4 = arith.constant 0 : index
    %3 = vector.load %arg3[%c0_3, %c0_4] : memref<2x128xf32, #tpu.memory_space<vmem>>, vector<1x128xf32>
    %c0_5 = arith.constant 0 : index
    %c0_6 = arith.constant 0 : index
    %4 = vector.load %arg4[%c0_5, %c0_6] : memref<8x128xf32, #tpu.memory_space<vmem>>, vector<8x128xf32>
    %cst = arith.constant dense<0.000000e+00> : vector<32x128xf32>
    %5 = tpu.matmul %2, %4, %cst {dimension_numbers = #tpu.dot_dimension_numbers<[1], [0], [0], [1], [0, 0, 1, 1], [], []>} : vector<32x8xf32>, vector<8x128xf32>, vector<32x128xf32> -> vector<32x128xf32>
    %6 = vector.broadcast %3 : vector<1x128xf32> to vector<32x128xf32>
    %7 = arith.subf %6, %5 : vector<32x128xf32>
    %8 = math.absf %7 : vector<32x128xf32>
    %9 = arith.mulf %8, %8 : vector<32x128xf32>
    %cst_7 = arith.constant 1.000000e+00 : f32
    %10 = vector.broadcast %cst_7 : f32 to vector<32x128xf32>
    %11 = arith.subf %10, %1 : vector<32x128xf32>
    %cst_8 = arith.constant 9.99999993E-9 : f32
    %12 = vector.broadcast %cst_8 : f32 to vector<32x128xf32>
    %13 = arith.addf %11, %12 : vector<32x128xf32>
    %14 = math.log %13 : vector<32x128xf32>
    %15 = arith.mulf %14, %9 : vector<32x128xf32>
    %cst_9 = arith.constant dense<0.000000e+00> : vector<32xf32>
    %16 = vector.multi_reduction <add>, %15, %cst_9 [1] : vector<32x128xf32> to vector<32xf32>
    %17 = vector.shape_cast %16 : vector<32xf32> to vector<32x1xf32>
    %cst_10 = arith.constant dense<0.000000e+00> : vector<1xf32>
    %18 = vector.multi_reduction <add>, %17, %cst_10 [0] : vector<32x1xf32> to vector<1xf32>
    %19 = vector.shape_cast %18 : vector<1xf32> to vector<1x1xf32>
    %cst_11 = arith.constant 0.000000e+00 : f32
    %20 = vector.broadcast %cst_11 : f32 to vector<1x1xf32>
    %21 = arith.subf %20, %19 : vector<1x1xf32>
    %c0_12 = arith.constant 0 : index
    %c0_13 = arith.constant 0 : index
    %c0_14 = arith.constant 0 : index
    %22 = vector.load %arg5[%c0_12, %c0_13, %c0_14] : memref<1x1x1xf32, #tpu.memory_space<vmem>>, vector<1x1x1xf32>
    %23 = vector.shape_cast %22 : vector<1x1x1xf32> to vector<1x1xf32>
    %24 = vector.shape_cast %21 : vector<1x1xf32> to vector<1x1x1xf32>
    tpu.vector_store %arg5[%c0_12, %c0_13, %c0_14], %24 {strides = array<i32>} : memref<1x1x1xf32, #tpu.memory_space<vmem>>, vector<1x1x1xf32>,
    return
  }
  func.func @transform_0(%arg0: i32) -> (i32, i32) {
    %c0_i32 = arith.constant 0 : i32
    %c0_i32_0 = arith.constant 0 : i32
    return %arg0, %c0_i32 : i32, i32
  }
  func.func @transform_1(%arg0: i32) -> (i32, i32) {
    %c0_i32 = arith.constant 0 : i32
    %c0_i32_0 = arith.constant 0 : i32
    return %arg0, %c0_i32 : i32, i32
  }
  func.func @transform_2(%arg0: i32) -> (i32, i32) {
    %c0_i32 = arith.constant 0 : i32
    %c0_i32_0 = arith.constant 0 : i32
    %c0_i32_1 = arith.constant 0 : i32
    return %c0_i32, %c0_i32_0 : i32, i32
  }
  func.func @transform_3(%arg0: i32) -> (i32, i32) {
    %c0_i32 = arith.constant 0 : i32
    %c0_i32_0 = arith.constant 0 : i32
    %c0_i32_1 = arith.constant 0 : i32
    return %c0_i32, %c0_i32_0 : i32, i32
  }
  func.func @transform_4(%arg0: i32) -> (i32, i32, i32) {
    %c0_i32 = arith.constant 0 : i32
    %c0_i32_0 = arith.constant 0 : i32
    %c0_i32_1 = arith.constant 0 : i32
    return %arg0, %c0_i32, %c0_i32_0 : i32, i32, i32
  }
}

</mosaic_0001>

<bundles_post_ra>
// kernel: tpu_custom_call.1
= control target key start
LH: loop header
LB: loop body
LE: loop exit
PB: predicated region body
PF: predicated region fallthrough
CT: control target
= control target key end

     0   :  { %vm32_vm0 = vcmask 64512   ;;  %s324_s0 = inlined_call_operand.vmem [shape: bf16[32,128], index: 0, kind: input, shape index: {}]   ;;  %s325_s1 = inlined_call_operand.vmem [shape: f32[32,8], index: 1, kind: input, shape index: {}]   ;;  %s326_s2 = inlined_call_operand.vmem [shape: f32[2,128], index: 2, kind: input, shape index: {}]   ;;  %s327_s3 = inlined_call_operand.vmem [shape: f32[8,128], index: 3, kind: input, shape index: {}]   ;;  %s328_s4 = inlined_call_operand.hbm [shape: f32[1,1,1], index: 4, kind: output, shape index: {}]  }
   0x1   :  { %v31_v0 = vld [vmem:[%s327_s3] sm:$0xff]  ;;  %v28_v2 = vld [vmem:[%s325_s1 + $0x10] sm:$0xff]  ;;  %v27_v3 = vld [vmem:[%s325_s1 + $0x8] sm:$0xff] }
   0x2   :  { %v26_v1 = vld [vmem:[%s325_s1] sm:$0xff]  ;;  %219 = vmatprep.subr.mxu0 %v31_v0  ;;  %227 = vmatprep.subr.mxu1 %v31_v0  ;;  %v29_v4 = vld [vmem:[%s325_s1 + $0x18] sm:$0xff] }
   0x3   :  { %220 = vmatpush3.msra.mxu0 %v31_v0  ;;  %228 = vmatpush3.msra.mxu1 %v31_v0 }
   0x4   :  { %9 = vsyncpa [#allocation3], 0  ;;  %221 = vmatprep.mubr.msk.f32.mxu0 %vm32_vm0, %v26_v1  ;;  %224 = vmatprep.mubr.msk.f32.mxu1 %vm32_vm0, %v28_v2  ;;  %v213_v5 = vld [vmem:[%s324_s0 + $0x8] sm:$0xff]   ;;  %v206_v6 = vld [vmem:[%s324_s0] sm:$0xff]   ;;  %s262_s0 = smov [#allocation2]   ;;  %vm184_vm1 = vcmask 0  }
   0x5   :  { %222 = vmatmul.mubr.msk.f32.vlgmr.msra.gmra.mrb[0].mxu0 %vm32_vm0, %v27_v3  ;;  %225 = vmatmul.mubr.msk.f32.vlgmr.msra.gmra.mrb[0].mxu1 %vm32_vm0, %v29_v4  ;;  %v211_v7 = vunpack.c.l.bf16 %v213_v5  ;;  %v207_v8 = vunpack.c.l.bf16 %v206_v6  ;;  %v212_v10 = vunpack.c.h.bf16 %v213_v5  ;;  %v208_v12 = vunpack.c.h.bf16 %v206_v6  ;;  %v204_v19 = vld [vmem:[%s326_s2] ss:$0 sm:$0xff]  ;;  %s192_s2 = sshll.u32 %s262_s0, 4  ;;  %s193_s2 = int_to_ptr.vmem [resolvable:$true] %s192_s2 }
   0x6   :  { %s238_s29 = scalar_lea.vmem %s193_s2, 16  ;;  %s242_s30 = scalar_lea.vmem %s193_s2, 32 }
   0x7   :  { %v148_v9 = vsub.f32 1.0, %v211_v7  ;;  %v146_v11 = vsub.f32 1.0, %v207_v8  ;;  %v149_v14 = vsub.f32 1.0, %v212_v10  ;;  %v147_v16 = vsub.f32 1.0, %v208_v12  ;;  %p239_p0 = scmp.ne.s32.totalorder %s193_s2, %s238_s29  ;;  %p243_p1 = scmp.lt.s32.totalorder %s193_s2, %s193_s2 }
   0x8   :  { %p244_p2 = scmp.lt.s32.totalorder %s242_s30, %s238_s29 }
   0x9   :  { %v152_v13 = vadd.f32 1e-08, %v148_v9  ;;  %v150_v15 = vadd.f32 1e-08, %v146_v11  ;;  %v153_v17 = vadd.f32 1e-08, %v149_v14 }
   0xa   :  { %v151_v18 = vadd.f32 1e-08, %v147_v16  ;;  %p245_p3 = por %p244_p2, %p243_p1 }
   0xb   :  { %230 = vlog2.f32 %v152_v13 }
   0xc   :  { %232 = vlog2.f32 %v150_v15  ;;  %p246_p4 = pnand %p245_p3, %p239_p0 }
   0xd   :  { %234 = vlog2.f32 %v153_v17 }
   0xe   :  { %236 = vlog2.f32 %v151_v18 }
  0x15   :  { %v231_v20 = vpop.eup %230 }
  0x16   :  { %v233_v21 = vpop.eup %232  ;;  %v159_v32 = vmul.f32 0.6931472, %v231_v20 }
  0x17   :  { %v235_v30 = vpop.eup %234  ;;  %v155_v33 = vmul.f32 0.6931472, %v233_v21 }
  0x18   :  { %v237_v37 = vpop.eup %236  ;;  %v161_v41 = vmul.f32 0.6931472, %v235_v30 }
  0x19   :  { %v157_v45 = vmul.f32 0.6931472, %v237_v37 }
  0xd8   :  { %v223_v22 = vpop.f32.mrb[0].mxu0  ;;  %v226_v23 = vpop.f32.mrb[0].mxu1 }
  0xd9   :  { %v135_v24 = vsub.f32 %v204_v19, %v223_v22  ;;  %v137_v25 = vsub.f32 %v204_v19, %v226_v23  ;;  %v111_v26 = vpop.f32.mrb[1].mxu0  ;;  %v121_v27 = vpop.f32.mrb[1].mxu1 }
  0xda   :  { %v134_v28 = vsub.f32 %v204_v19, %v111_v26  ;;  %v136_v29 = vsub.f32 %v204_v19, %v121_v27 }
  0xdb   :  { %v141_v31 = vand.u32 2147483647, %v137_v25  ;;  %v139_v34 = vand.u32 2147483647, %v135_v24 }
  0xdc   :  { %v138_v35 = vand.u32 2147483647, %v134_v28  ;;  %v140_v36 = vand.u32 2147483647, %v136_v29 }
  0xdd   :  { %v145_v38 = vmul.f32 %v141_v31, %v141_v31  ;;  %v143_v42 = vmul.f32 %v139_v34, %v139_v34 }
  0xde   :  { %v142_v39 = vmul.f32 %v138_v35, %v138_v35  ;;  %v144_v40 = vmul.f32 %v140_v36, %v140_v36 }
  0xdf   :  { %v165_v46 = vmul.f32 %v161_v41, %v145_v38  ;;  %v163_v47 = vmul.f32 %v157_v45, %v143_v42 }
  0xe0   :  { %v164_v43 = vmul.f32 %v159_v32, %v144_v40  ;;  %v162_v44 = vmul.f32 %v155_v33, %v142_v39 }
  0xe2   :  { %170 = vadd.xlane.f32.xlu1 %v164_v43  ;;  %166 = vadd.xlane.f32.xlu0 %v162_v44 }
  0xe6   :  { %172 = vadd.xlane.f32.xlu1 %v165_v46  ;;  %168 = vadd.xlane.f32.xlu0 %v163_v47 }
 0x16f   :  { %v167_v48 = vpop.xlane.xlu0 %166  ;;  %v171_v49 = vpop.xlane.xlu1 %170 }
 0x173   :  { %v169_v50 = vpop.xlane.xlu0 %168  ;;  %v173_v53 = vpop.xlane.xlu1 %172 }
 0x174   :  { %v174_v51 = vadd.f32 %v169_v50, %v167_v48 }
 0x176   :  { %v175_v52 = vadd.f32 %v174_v51, %v171_v49 }
 0x178   :  { %v176_v54 = vadd.f32 %v175_v52, %v173_v53 }
 0x17a   :  { %v177_v55 = vrot.slane %v176_v54, 4 }
 0x17c   :  { %v178_v56 = vadd.f32 %v177_v55, %v176_v54 }
 0x17e   :  { %v179_v57 = vrot.slane %v178_v56, 2 }
 0x180   :  { %v180_v58 = vadd.f32 %v179_v57, %v178_v56 }
 0x182   :  { %v181_v59 = vrot.slane %v180_v58, 1 }
 0x184   :  { %v182_v60 = vadd.f32 %v181_v59, %v180_v58 }
 0x186   :  { %v183_v61 = vsub.f32 0.0, %v182_v60 }
 0x188   :  { %185 = vst.msk [vmem:[#allocation2] sm:$0x1] %vm184_vm1, %v183_v61 }
 0x189   :  { %249 = shalt.err (!%p246_p4)
}
 0x18a   :  { %s250_s7 = scalar_lea.hbm %s328_s4, 16 }
 0x18b   :  { %p251_p5 = scmp.ne.s32.totalorder %s328_s4, %s250_s7  ;;  %p254_p6 = scmp.lt.u32.totalorder %s250_s7, %s328_s4 }
 0x18d   :  { %p256_p7 = pnand %p254_p6, %p251_p5 }
 0x18f   :  { %259 = shalt.err (!%p256_p7)
}
 0x190   :  { %195 = dma.vmem_to_hbm [thread:$0]  %s193_s2, 16, %s328_s4, [#allocation3]  }
 0x191   :  { %260 = dma.done.wait [#allocation3], 16  }
 0x192   :  { %261 = vsyncadd [#allocation3], 4294967280 }
 0x193   :  { %199 = vsyncpa [#allocation3], 1 }

</bundles_post_ra>
